<compile_context>
chip_gen: v5e
topology: v5e:2x2
jax: 0.10.0
libtpu: 0.0.40
codegen_flags: <defaults>
</compile_context>

<pallas_src>
import functools

import jax
import jax.numpy as jnp
import numpy as np
from jax import lax
from jax.experimental import pallas as pl
from jax.experimental.pallas import tpu as pltpu

LANE = 128  # lane-dense output width


# ---------------------------------------------------------------------------
# Single fused kernel (one grid step per episode):
#   diff  = q @ Mcat                         (Qpad, way*d)   bf16 in, f32 acc
#   dist  = (diff*diff) @ ones_blk           (Qpad, LANE)    block-diag reduce per way
#   means = avgT @ dist                      (G, LANE)       mean over `resolution`
#   out   = log_softmax(-means*scale) over the first `way` lanes (rest padded w/ -1e30)
# ---------------------------------------------------------------------------
def _frn_kernel(way, scale_ref, q_ref, m_ref, ones_ref, avgT_ref, out_ref):
    scale = scale_ref[0]                                   # SMEM scalar
    q = q_ref[0]                                           # (Qpad, d)       bf16
    m = m_ref[0]                                           # (d, way*d)      bf16

    diff = jnp.dot(q, m, preferred_element_type=jnp.float32)        # (Qpad, way*d)
    diff2 = diff * diff
    dist = jnp.dot(diff2, ones_ref[...],
                   preferred_element_type=jnp.float32)               # (Qpad, LANE)
    means = jnp.dot(avgT_ref[...], dist,
                    preferred_element_type=jnp.float32)               # (G, LANE)

    logits = -means * scale
    lane = lax.broadcasted_iota(jnp.int32, logits.shape, 1)
    logits = jnp.where(lane < way, logits, -1e30)          # padded ways -> ~ -inf

    mx = jnp.max(logits, axis=-1, keepdims=True)
    shifted = logits - mx
    lse = jnp.log(jnp.sum(jnp.exp(shifted), axis=-1, keepdims=True))
    out_ref[0] = shifted - lse                             # (G, LANE) unmasked store


def frn_forward(support, query, way_num, shot_num, query_num,
                scale, r, resolution=25):
    """Pallas implementation of FRNLayer.forward (Woodbury=True path)."""
    B, way, sr, d = support.shape
    Q = query.shape[1]
    G = way_num * query_num
    assert Q == G * resolution and way == way_num

    f32 = jnp.float32
    reg = sr / d
    lam = reg * jnp.exp(r[0]) + 1e-6
    rho = jnp.exp(r[1])

    # ---- XLA glue (tiny): Gram, regularized SPD solve, fold rho and the -I ----
    # TODO(synk): the matrix solve/inverse has no Pallas primitive; it stays in XLA.
    sup = support.astype(f32)
    sts = jnp.einsum("bwrc,bwrd->bwcd", sup, sup,
                     precision=lax.Precision.HIGHEST)              # [B, way, d, d]
    a = sts + lam * jnp.eye(d, dtype=f32)
    hat = jnp.linalg.solve(a, sts)        # better conditioned than explicit inverse
    M = rho * hat - jnp.eye(d, dtype=f32)                          # q@M = q_bar - q
    # concat ways along the output (lane) axis: Mcat[b, i, w*d + j] = M[b, w, i, j]
    Mcat = jnp.transpose(M, (0, 2, 1, 3)).reshape(B, d, way * d)

    # ---- operand prep: pad Q to a multiple of 8, cast MXU operands to bf16 ----
    Qpad = -(-Q // 8) * 8
    q_pad = jnp.pad(query.astype(f32), ((0, 0), (0, Qpad - Q), (0, 0)))
    q_bf = q_pad.astype(jnp.bfloat16)
    m_bf = Mcat.astype(jnp.bfloat16)

    # block-diagonal reducer: column w sums the w-th d-wide block of diff^2
    ones_blk = np.zeros((way * d, LANE), np.float32)
    for w in range(way):
        ones_blk[w * d:(w + 1) * d, w] = 1.0
    ones_blk = jnp.asarray(ones_blk)

    # transposed group-mean matrix: row g averages the `resolution` rows of group g
    avgT = np.zeros((G, Qpad), np.float32)
    for g in range(G):
        avgT[g, g * resolution:(g + 1) * resolution] = 1.0 / resolution
    avgT = jnp.asarray(avgT)

    scale_arr = scale.reshape(-1).astype(f32)[:1]                  # (1,) SMEM scalar

    # TODO(synk): at realistic FRN sizes (d~640, Q~1875) tile Q with an 'arbitrary'
    # accumulation axis and set vmem_limit_bytes (v7x has 64 MiB VMEM).
    kernel = functools.partial(_frn_kernel, way)
    out_padded = pl.pallas_call(
        kernel,
        out_shape=jax.ShapeDtypeStruct((B, G, LANE), jnp.float32),
        grid=(B,),
        in_specs=[
            pl.BlockSpec(memory_space=pltpu.MemorySpace.SMEM),       # scale
            pl.BlockSpec((1, Qpad, d), lambda b: (b, 0, 0)),         # query (bf16)
            pl.BlockSpec((1, d, way * d), lambda b: (b, 0, 0)),      # Mcat  (bf16)
            pl.BlockSpec((way * d, LANE), lambda b: (0, 0)),         # block reducer
            pl.BlockSpec((G, Qpad), lambda b: (0, 0)),               # group-mean
        ],
        out_specs=pl.BlockSpec((1, G, LANE), lambda b: (b, 0, 0)),
        compiler_params=pltpu.CompilerParams(
            dimension_semantics=("parallel",)),
    )(scale_arr, q_bf, m_bf, ones_blk, avgT)

    return out_padded[:, :, :way]                                   # (B, G, way)


# ---------------------------------------------------------------------------
# Pure-JAX reference (mirrors the PyTorch module exactly, f32 highest precision)
# ---------------------------------------------------------------------------
def frn_reference(support, query, way, shot, query_shot, scale, r, resolution=25):
    with jax.default_matmul_precision("highest"):
        d = support.shape[3]
        reg = support.shape[2] / support.shape[3]
        lam = reg * jnp.exp(r[0]) + 1e-6
        rho = jnp.exp(r[1])
        st = jnp.swapaxes(support, 2, 3)                   # [B, way, d, sr]
        sts = st @ support                                 # [B, way, d, d]
        m_inv = jnp.linalg.inv(sts + jnp.eye(d, dtype=jnp.float32) * lam)
        hat = m_inv @ sts
        q = query[:, None, :, :]                           # [B, 1, Q, d]
        q_bar = (q @ hat) * rho                            # [B, way, Q, d]
        dist = jnp.sum((q_bar - q) ** 2, axis=3)           # [B, way, Q]
        dist = jnp.transpose(dist, (0, 2, 1))              # [B, Q, way]
        neg = -jnp.mean(dist.reshape(-1, way * query_shot, resolution, way), axis=2)
        logits = neg * scale
        return jax.nn.log_softmax(logits, axis=2)


if __name__ == "__main__":
    key = jax.random.PRNGKey(0)
    B, way, shot, query_shot = 2, 2, 1, 2
    resolution, d = 25, 32                                 # module fixes resolution=25

    k1, k2 = jax.random.split(key)
    support = jax.random.normal(k1, (B, way, shot * resolution, d), jnp.float32)
    query = jax.random.normal(k2, (B, way * query_shot * resolution, d), jnp.float32)

    # deterministic parameter init, matching FRNLayer.__init__
    scale = jnp.array([1.0], jnp.float32)                  # nn.Parameter([1.0])
    r = jnp.zeros((2,), jnp.float32)                       # nn.Parameter(zeros(2))

    out = jax.block_until_ready(
        frn_forward(support, query, way, shot, query_shot, scale, r, resolution))

    ref = frn_reference(support, query, way, shot, query_shot, scale, r, resolution)
    assert out.shape == (B, way * query_shot, way)
    # tolerance covers bf16 MXU operands (f32 accumulation) in the kernel
    np.testing.assert_allclose(np.asarray(out), np.asarray(ref), rtol=5e-2, atol=5e-2)

    print("KERNEL_OK")
</pallas_src>

<mosaic_0001>
module attributes {stable_mosaic.version = 11 : i64} {
  func.func @_frn_kernel(%arg0: i32, %arg1: memref<1xf32, #tpu.memory_space<smem>>, %arg2: memref<1x104x32xbf16, #tpu.memory_space<vmem>>, %arg3: memref<1x32x64xbf16, #tpu.memory_space<vmem>>, %arg4: memref<64x128xf32, #tpu.memory_space<vmem>>, %arg5: memref<4x104xf32, #tpu.memory_space<vmem>>, %arg6: memref<1x4x128xf32, #tpu.memory_space<vmem>>) attributes {dimension_semantics = [#tpu.dimension_semantics<parallel>], iteration_bounds = array<i64: 2>, scalar_prefetch = 0 : i64, scratch_operands = 0 : i64, tpu.core_type = #tpu.core_type<tc>, window_params = [{transform_indices = @transform_0, window_bounds = array<i64: 1>}, {transform_indices = @transform_1, window_bounds = array<i64: 1, 104, 32>}, {transform_indices = @transform_2, window_bounds = array<i64: 1, 32, 64>}, {pipeline_mode = #tpu.pipeline_mode<synchronous>, transform_indices = @transform_3, window_bounds = array<i64: 64, 128>}, {pipeline_mode = #tpu.pipeline_mode<synchronous>, transform_indices = @transform_4, window_bounds = array<i64: 4, 104>}, {transform_indices = @transform_5, window_bounds = array<i64: 1, 4, 128>}]} {
    %c0 = arith.constant 0 : index
    %0 = memref.load %arg1[%c0] : memref<1xf32, #tpu.memory_space<smem>>
    %c0_0 = arith.constant 0 : index
    %c0_1 = arith.constant 0 : index
    %c0_2 = arith.constant 0 : index
    %1 = vector.load %arg2[%c0_0, %c0_1, %c0_2] : memref<1x104x32xbf16, #tpu.memory_space<vmem>>, vector<1x104x32xbf16>
    %2 = vector.shape_cast %1 : vector<1x104x32xbf16> to vector<104x32xbf16>
    %c0_3 = arith.constant 0 : index
    %c0_4 = arith.constant 0 : index
    %c0_5 = arith.constant 0 : index
    %3 = vector.load %arg3[%c0_3, %c0_4, %c0_5] : memref<1x32x64xbf16, #tpu.memory_space<vmem>>, vector<1x32x64xbf16>
    %4 = vector.shape_cast %3 : vector<1x32x64xbf16> to vector<32x64xbf16>
    %cst = arith.constant dense<0.000000e+00> : vector<104x64xf32>
    %5 = tpu.matmul %2, %4, %cst {dimension_numbers = #tpu.dot_dimension_numbers<[1], [0], [0], [1], [0, 0, 1, 1], [], []>} : vector<104x32xbf16>, vector<32x64xbf16>, vector<104x64xf32> -> vector<104x64xf32>
    %6 = arith.mulf %5, %5 : vector<104x64xf32>
    %c0_6 = arith.constant 0 : index
    %c0_7 = arith.constant 0 : index
    %7 = vector.load %arg4[%c0_6, %c0_7] : memref<64x128xf32, #tpu.memory_space<vmem>>, vector<64x128xf32>
    %cst_8 = arith.constant dense<0.000000e+00> : vector<104x128xf32>
    %8 = tpu.matmul %6, %7, %cst_8 {dimension_numbers = #tpu.dot_dimension_numbers<[1], [0], [0], [1], [0, 0, 1, 1], [], []>} : vector<104x64xf32>, vector<64x128xf32>, vector<104x128xf32> -> vector<104x128xf32>
    %c0_9 = arith.constant 0 : index
    %c0_10 = arith.constant 0 : index
    %9 = vector.load %arg5[%c0_9, %c0_10] : memref<4x104xf32, #tpu.memory_space<vmem>>, vector<4x104xf32>
    %cst_11 = arith.constant dense<0.000000e+00> : vector<4x128xf32>
    %10 = tpu.matmul %9, %8, %cst_11 {dimension_numbers = #tpu.dot_dimension_numbers<[1], [0], [0], [1], [0, 0, 1, 1], [], []>} : vector<4x104xf32>, vector<104x128xf32>, vector<4x128xf32> -> vector<4x128xf32>
    %cst_12 = arith.constant 0.000000e+00 : f32
    %11 = vector.broadcast %cst_12 : f32 to vector<4x128xf32>
    %12 = arith.subf %11, %10 : vector<4x128xf32>
    %13 = vector.broadcast %0 : f32 to vector<4x128xf32>
    %14 = arith.mulf %12, %13 : vector<4x128xf32>
    %15 = tpu.iota {dimensions = array<i32: 1>} : vector<4x128xi32>
    %c2_i32 = arith.constant 2 : i32
    %16 = vector.broadcast %c2_i32 : i32 to vector<4x128xi32>
    %17 = arith.cmpi slt, %15, %16 : vector<4x128xi32>
    %cst_13 = arith.constant -1.000000e+30 : f32
    %18 = vector.broadcast %cst_13 : f32 to vector<4x128xf32>
    %19 = arith.select %17, %14, %18 : vector<4x128xi1>, vector<4x128xf32>
    %cst_14 = arith.constant dense<0xFF800000> : vector<4xf32>
    %20 = vector.multi_reduction <maximumf>, %19, %cst_14 [1] : vector<4x128xf32> to vector<4xf32>
    %21 = vector.shape_cast %20 : vector<4xf32> to vector<4x1xf32>
    %22 = vector.broadcast %21 : vector<4x1xf32> to vector<4x128xf32>
    %23 = arith.subf %19, %22 : vector<4x128xf32>
    %24 = math.exp %23 : vector<4x128xf32>
    %cst_15 = arith.constant dense<0.000000e+00> : vector<4xf32>
    %25 = vector.multi_reduction <add>, %24, %cst_15 [1] : vector<4x128xf32> to vector<4xf32>
    %26 = vector.shape_cast %25 : vector<4xf32> to vector<4x1xf32>
    %27 = math.log %26 : vector<4x1xf32>
    %28 = vector.broadcast %27 : vector<4x1xf32> to vector<4x128xf32>
    %29 = arith.subf %23, %28 : vector<4x128xf32>
    %c0_16 = arith.constant 0 : index
    %c0_17 = arith.constant 0 : index
    %c0_18 = arith.constant 0 : index
    %30 = vector.load %arg6[%c0_16, %c0_17, %c0_18] : memref<1x4x128xf32, #tpu.memory_space<vmem>>, vector<1x4x128xf32>
    %31 = vector.shape_cast %30 : vector<1x4x128xf32> to vector<4x128xf32>
    %32 = vector.shape_cast %29 : vector<4x128xf32> to vector<1x4x128xf32>
    tpu.vector_store %arg6[%c0_16, %c0_17, %c0_18], %32 {strides = array<i32>} : memref<1x4x128xf32, #tpu.memory_space<vmem>>, vector<1x4x128xf32>,
    return
  }
  func.func @transform_0(%arg0: i32) -> i32 {
    %c0_i32 = arith.constant 0 : i32
    %c0_i32_0 = arith.constant 0 : i32
    return %c0_i32 : i32
  }
  func.func @transform_1(%arg0: i32) -> (i32, i32, i32) {
    %c0_i32 = arith.constant 0 : i32
    %c0_i32_0 = arith.constant 0 : i32
    %c0_i32_1 = arith.constant 0 : i32
    return %arg0, %c0_i32, %c0_i32_0 : i32, i32, i32
  }
  func.func @transform_2(%arg0: i32) -> (i32, i32, i32) {
    %c0_i32 = arith.constant 0 : i32
    %c0_i32_0 = arith.constant 0 : i32
    %c0_i32_1 = arith.constant 0 : i32
    return %arg0, %c0_i32, %c0_i32_0 : i32, i32, i32
  }
  func.func @transform_3(%arg0: i32) -> (i32, i32) {
    %c0_i32 = arith.constant 0 : i32
    %c0_i32_0 = arith.constant 0 : i32
    %c0_i32_1 = arith.constant 0 : i32
    return %c0_i32, %c0_i32_0 : i32, i32
  }
  func.func @transform_4(%arg0: i32) -> (i32, i32) {
    %c0_i32 = arith.constant 0 : i32
    %c0_i32_0 = arith.constant 0 : i32
    %c0_i32_1 = arith.constant 0 : i32
    return %c0_i32, %c0_i32_0 : i32, i32
  }
  func.func @transform_5(%arg0: i32) -> (i32, i32, i32) {
    %c0_i32 = arith.constant 0 : i32
    %c0_i32_0 = arith.constant 0 : i32
    %c0_i32_1 = arith.constant 0 : i32
    return %arg0, %c0_i32, %c0_i32_0 : i32, i32, i32
  }
}

</mosaic_0001>

<bundles_post_ra>
// kernel: tpu_custom_call.1
= control target key start
LH: loop header
LB: loop body
LE: loop exit
PB: predicated region body
PF: predicated region fallthrough
CT: control target
= control target key end

     0   :  { %s992_s0 = inlined_call_operand.<no memory space> [shape: f32[1], index: 0, kind: input, shape index: {}]   ;;  %s993_s1 = inlined_call_operand.vmem [shape: bf16[2,104,32], index: 1, kind: input, shape index: {}]   ;;  %s994_s2 = inlined_call_operand.vmem [shape: bf16[2,32,64], index: 2, kind: input, shape index: {}]   ;;  %s995_s3 = inlined_call_operand.vmem [shape: f32[64,128], index: 3, kind: input, shape index: {}]   ;;  %s996_s4 = inlined_call_operand.vmem [shape: f32[4,104], index: 4, kind: input, shape index: {}]   ;;  %s997_s5 = inlined_call_operand.hbm [shape: f32[2,4,128], index: 5, kind: output, shape index: {}]  }
   0x1   :  { %10 = sst [smem:[#allocation2]] %s992_s0 }
   0x2   :  { %11 = vsyncpa [#allocation4], 0 }
   0x3   :  { %13 = vsyncpa [#allocation4 + $0x1], 0  ;;  %s848_s20 = smov 0   ;;  %s850_s21 = smov 0  }
   0x4   :  { %s852_s22 = smov 0   ;;  %s854_s23 = smov 0  }
   0x5 LB: > { %s869_s0 = sadd.s32 4294967295, %s813_s23   ;;  %s623_s24 = sadd.s32 4294967294, %s813_s23   ;;  %s813_s23 = sphi %s854_s23, %s1003_s23   ;;  %s809_s22 = sphi %s852_s22, %s1002_s22   ;;  %s805_s21 = sphi %s850_s21, %s1001_s21   ;;  %s801_s20 = sphi %s848_s20, %s1000_s20  }
   0x6   : > { %s873_s25 = sadd.s32 1, %s813_s23   ;;  %s141_s26 = sadd.s32 1, %s809_s22 }
   0x7   : > { %s138_s27 = ssub.s32 %s813_s23, %s873_s25  ;;  %p151_p0 = scmp.ne.s32.totalorder %s809_s22, %s805_s21 }
   0x8   : > { %p139_p1 = scmp.eq.s32.totalorder %s138_s27, 0  ;;  %p152_p2 = scmp.eq.s32.totalorder %s869_s0, 1 }
   0x9   : > { %p157_p3 = scmp.ne.s32.totalorder %s805_s21, %s801_s20  ;;  %p158_p4 = scmp.eq.s32.totalorder %s623_s24, 1 }
   0xa   : > { %s884_s28 = scalar_select %p139_p1, %s809_s22, %s141_s26  }
   0xb   : > { %p886_p5 = por %p152_p2, %p151_p0  ;;  %p890_p6 = por %p158_p4, %p157_p3 }
   0xc   : > { %p626_p7 = scmp.ge.s32.totalorder %s813_s23, 1  ;;  %p201_p8 = scmp.lt.s32.totalorder %s813_s23, 3 }
   0xe   : > { %p202_p9 = pnand %p626_p7, %p201_p8 }
   0xf   : > { %p234_p10 = scmp.lt.s32.totalorder (!%p202_p9), %s869_s0, 1  ;;  %s245_s16 = sld [smem:[#allocation2]] (!%p202_p9) }
  0x10   : > { %205 = sbr.rel (%p202_p9) target bundleno = 810 (0x32a), region = 40  ;;  %s231_s17 = sand.u32 (!%p202_p9), 1, %s805_s21  }
  0x11   : > { %s627_s18 = sshll.u32 (!%p202_p9), %s231_s17, 2  ;;  %s685_s19 = sshll.u32 (!%p202_p9), %s869_s0, 2 }
  0x12   : > { %s547_s27 = scalar_lea.hbm (!%p202_p9), %s997_s5, %s685_s19  ;;  %s537_s9 = scalar_lea.sflag (!%p202_p9), [#allocation4], %s231_s17 }
  0x13   : > { %s771_s13 = scalar_lea.hbm (!%p202_p9), %s997_s5, 8 }
  0x15   : > { %s235_s6 = scalar_select %p234_p10, %s869_s0, 1  ;;  %vm308_vm0 = vcmask 261120   ;;  %v393_v5 = vld [vmem:[%s995_s3 + $0x38] sm:$0xff]  ;;  %v392_v6 = vld [vmem:[%s995_s3 + $0x30] sm:$0xff]  ;;  %v391_v7 = vld [vmem:[%s995_s3 + $0x28] sm:$0xff]  ;;  %vm394_vm1 = vcmask 523264   ;;  %v518_v60 = vlaneseq  ;;  %v516_v63 = vstv %s245_s16 }
  0x16   : > { %442 = vmatpush.msra.mxu1 %v393_v5  ;;  %699 = vmatpush.msra.mxu2 %v393_v5  ;;  %v390_v8 = vld [vmem:[%s995_s3 + $0x20] sm:$0xff]  ;;  %v389_v9 = vld [vmem:[%s995_s3 + $0x18] sm:$0xff]  ;;  %v388_v10 = vld [vmem:[%s995_s3 + $0x10] sm:$0xff]  ;;  %vm491_vm2 = vcmask 850944   ;;  %vm522_vm4 = vcmask 1043456  }
  0x17   : > { %s707_s7 = smul.u32 52, %s235_s6  ;;  %s688_s8 = sshll.u32 %s235_s6, 4  ;;  %v387_v17 = vld [vmem:[%s995_s3 + $0x8] sm:$0xff]  ;;  %v386_v18 = vld [vmem:[%s995_s3] sm:$0xff]  ;;  %v519_v61 = vand.u32 127, %v518_v60 }
  0x18   : > { %s243_s11 = scalar_lea.vmem %s994_s2, %s688_s8  ;;  %443 = vmatpush.msra.mxu1 %v392_v6  ;;  %700 = vmatpush.msra.mxu2 %v392_v6  ;;  %v490_v59 = vld [vmem:[%s996_s4] sm:$0xf]  ;;  %s233_s6 = scalar_lea.vmem [#allocation3], %s627_s18 }
  0x19   : > { %v696_v0 = vld [vmem:[%s243_s11 + $0x8] sm:$0xff]  ;;  %s904_s14 = scalar_lea.vmem %s993_s1, %s707_s7  ;;  %v695_v1 = vld [vmem:[%s243_s11] sm:$0xff]  ;;  %vm520_vm3 = vcmp.lt.s32.totalorder %v519_v61, 2  ;;  %s549_s7 = sshll.u32 %s233_s6, 4  ;;  %s550_s7 = int_to_ptr.vmem [resolvable:$true] %s549_s7 }
  0x1a   : > { %336 = vmatpush.bf16.msra.mxu0 %v696_v0  ;;  %697 = vmatpush.bf16.msra.mxu3 %v696_v0  ;;  %v689_v2 = vld [vmem:[%s904_s14] sm:$0xff]  ;;  %v690_v3 = vld [vmem:[%s904_s14 + $0x8] sm:$0xff]  ;;  %v691_v11 = vld [vmem:[%s904_s14 + $0x10] sm:$0xff]  ;;  %s551_s8 = sshll.u32 %s547_s27, 4  ;;  %s552_s8 = int_to_ptr.hbm [resolvable:$true] %s551_s8 }
  0x1b   : > { %v693_v4 = vld [vmem:[%s904_s14 + $0x20] sm:$0xff]  ;;  %444 = vmatpush.msra.mxu1 %v391_v7  ;;  %701 = vmatpush.msra.mxu2 %v391_v7  ;;  %v694_v12 = vld [vmem:[%s904_s14 + $0x28] sm:$0xff]  ;;  %v258_v13 = vld [vmem:[%s904_s14 + $0x30] sm:$0xf]  ;;  %s765_s10 = sshra.s32 %s552_s8, 4  ;;  %s766_s10 = int_to_ptr.hbm [resolvable:$true] %s765_s10 }
  0x1c   : > { %v288_v14 = vunpack.c.l.b16 %v258_v13  ;;  %v692_v15 = vld [vmem:[%s904_s14 + $0x18] sm:$0xff]  ;;  %s767_s11 = scalar_lea.hbm %s766_s10, 4  ;;  %p772_p0 = scmp.lt.s32.totalorder %s766_s10, %s997_s5 }
  0x1d   : > { %445 = vmatpush.msra.mxu1 %v390_v8  ;;  %702 = vmatpush.msra.mxu2 %v390_v8  ;;  %p768_p11 = scmp.ne.s32.totalorder %s766_s10, %s767_s11  ;;  %p773_p1 = scmp.lt.s32.totalorder %s771_s13, %s767_s11 }
  0x1e   : > { %337 = vmatpush.bf16.msra.mxu0 %v695_v1  ;;  %698 = vmatpush.bf16.msra.mxu3 %v695_v1  ;;  %v295_v16 = vpack.c.b16 %v288_v14, %v288_v14 }
  0x1f   : > { %446 = vmatpush.msra.mxu1 %v389_v9  ;;  %703 = vmatpush.msra.mxu2 %v389_v9  ;;  %p769_p12 = pnand %p768_p11, %p886_p5  ;;  %p774_p2 = por %p773_p1, %p772_p0 }
  0x21   : > { %663 = vmatmul.msk.bf16.vlgmr.msra.gmra.mxu0 %vm308_vm0, %v689_v2  ;;  %667 = vmatmul.msk.bf16.vlgmr.msra.gmra.mxu3 %vm308_vm0, %v693_v4  ;;  %p770_p13 = pneg %p769_p12 }
  0x22   : > { %447 = vmatpush.msra.mxu1 %v388_v10  ;;  %704 = vmatpush.msra.mxu2 %v388_v10 }
  0x23   : > { %p775_p3 = pnand %p774_p2, %p770_p13 }
  0x24   : > { %448 = vmatpush.msra.mxu1 %v387_v17  ;;  %705 = vmatpush.msra.mxu2 %v387_v17 }
  0x26   : > { %449 = vmatpush.msra.mxu1 %v386_v18  ;;  %706 = vmatpush.msra.mxu2 %v386_v18 }
  0x31   : > { %664 = vmatmul.msk.bf16.gmra.mxu0 %vm308_vm0, %v690_v3  ;;  %668 = vmatmul.msk.bf16.gmra.mxu3 %vm308_vm0, %v694_v12 }
  0x41   : > { %665 = vmatmul.msk.bf16.gmra.mxu0 %vm308_vm0, %v691_v11  ;;  %669 = vmatmul.msk.bf16.gmra.mxu3 %vm308_vm0, %v295_v16 }
  0x51   : > { %666 = vmatmul.msk.bf16.gmra.mxu0 %vm308_vm0, %v692_v15 }
  0x9e   : > { %v339_v19 = vpop.f32.mrf.mxu0 }
  0x9f   : > { %v373_v20 = vmul.f32 %v339_v19, %v339_v19 }
  0xa1   : > { %670 = vmatmul.msk.f32.vlgmr.msra.gmra.mxu1 %vm394_vm1, %v373_v20 }
  0xa4   : > { %v359_v26 = vpop.f32.mrf.mxu3 }
  0xa5   : > { %v381_v40 = vmul.f32 %v359_v26, %v359_v26 }
  0xa6   : > { %v341_v21 = vpop.f32.mrf.mxu0 }
  0xa7   : > { %v374_v22 = vmul.f32 %v341_v21, %v341_v21 }
  0xa9   : > { %671 = vmatmul.msk.f32.gmra.mxu1 %vm394_vm1, %v374_v22 }
  0xac   : > { %v361_v29 = vpop.f32.mrf.mxu3 }
  0xad   : > { %v382_v42 = vmul.f32 %v361_v29, %v361_v29 }
  0xae   : > { %v344_v23 = vpop.f32.mrf.mxu0 }
  0xaf   : > { %v375_v24 = vmul.f32 %v344_v23, %v344_v23 }
  0xb1   : > { %672 = vmatmul.msk.f32.gmra.mxu1 %vm394_vm1, %v375_v24 }
  0xb4   : > { %v364_v32 = vpop.f32.mrf.mxu3 }
  0xb5   : > { %v383_v43 = vmul.f32 %v364_v32, %v364_v32 }
  0xb6   : > { %v346_v25 = vpop.f32.mrf.mxu0 }
  0xb7   : > { %v376_v27 = vmul.f32 %v346_v25, %v346_v25 }
  0xb9   : > { %673 = vmatmul.msk.f32.gmra.mxu1 %vm394_vm1, %v376_v27 }
  0xbc   : > { %v366_v35 = vpop.f32.mrf.mxu3 }
  0xbd   : > { %v384_v44 = vmul.f32 %v366_v35, %v366_v35 }
  0xbe   : > { %v349_v28 = vpop.f32.mrf.mxu0 }
  0xbf   : > { %v377_v30 = vmul.f32 %v349_v28, %v349_v28 }
  0xc1   : > { %674 = vmatmul.msk.f32.gmra.mxu1 %vm394_vm1, %v377_v30 }
  0xc4   : > { %v369_v38 = vpop.f32.mrf.mxu3 }
  0xc5   : > { %v385_v45 = vmul.f32 %v369_v38, %v369_v38 }
  0xc6   : > { %v351_v31 = vpop.f32.mrf.mxu0 }
  0xc7   : > { %v378_v33 = vmul.f32 %v351_v31, %v351_v31 }
  0xc9   : > { %675 = vmatmul.msk.f32.gmra.mxu1 %vm394_vm1, %v378_v33 }
  0xcc   : > { %v371_v41 = vpop.f32.mrf.mxu3 }
  0xce   : > { %v354_v34 = vpop.f32.mrf.mxu0 }
  0xcf   : > { %v379_v36 = vmul.f32 %v354_v34, %v354_v34 }
  0xd1   : > { %676 = vmatmul.msk.f32.gmra.mxu1 %vm394_vm1, %v379_v36 }
  0xd6   : > { %v356_v37 = vpop.f32.mrf.mxu0 }
  0xd7   : > { %v380_v39 = vmul.f32 %v356_v37, %v356_v37 }
  0xd9   : > { %677 = vmatmul.msk.f32.vlgmr.msra.gmra.mxu2 %vm394_vm1, %v380_v39 }
  0xe1   : > { %678 = vmatmul.msk.f32.gmra.mxu2 %vm394_vm1, %v381_v40 }
  0xe9   : > { %679 = vmatmul.msk.f32.gmra.mxu2 %vm394_vm1, %v382_v42 }
  0xf1   : > { %680 = vmatmul.msk.f32.gmra.mxu2 %vm394_vm1, %v383_v43 }
  0xf9   : > { %681 = vmatmul.msk.f32.gmra.mxu2 %vm394_vm1, %v384_v44 }
 0x101   : > { %682 = vmatmul.msk.f32.gmra.mxu2 %vm394_vm1, %v385_v45 }
 0x11e   : > { %v451_v46 = vpop.f32.mrf.mxu1 }
 0x126   : > { %v454_v48 = vpop.f32.mrf.mxu1 }
 0x12e   : > { %v457_v50 = vpop.f32.mrf.mxu1 }
 0x136   : > { %v460_v52 = vpop.f32.mrf.mxu1 }
 0x13e   : > { %v463_v54 = vpop.f32.mrf.mxu1 }
 0x146   : > { %v466_v57 = vpop.f32.mrf.mxu1 }
 0x14e   : > { %v469_v58 = vpop.f32.mrf.mxu1 }
 0x15c   : > { %v472_v47 = vpop.f32.mrf.mxu2 }
 0x164   : > { %v475_v49 = vpop.f32.mrf.mxu2 }
 0x16c   : > { %v478_v51 = vpop.f32.mrf.mxu2 }
 0x174   : > { %v481_v53 = vpop.f32.mrf.mxu2 }
 0x17c   : > { %v484_v55 = vpop.f32.mrf.mxu2 }
 0x184   : > { %v487_v56 = vpop.f32.mrf.mxu2 }
 0x185   : > { %498 = vmatpush.msrb.mxu2 %v487_v56 }
 0x187   : > { %499 = vmatpush.msrb.mxu2 %v484_v55 }
 0x189   : > { %500 = vmatpush.msrb.mxu2 %v481_v53 }
 0x18b   : > { %501 = vmatpush.msrb.mxu2 %v478_v51 }
 0x18d   : > { %502 = vmatpush.msrb.mxu2 %v475_v49 }
 0x18f   : > { %503 = vmatpush.msrb.mxu2 %v472_v47 }
 0x191   : > { %504 = vmatpush.msrb.mxu2 %v469_v58 }
 0x193   : > { %505 = vmatpush.msrb.mxu2 %v466_v57 }
 0x195   : > { %506 = vmatpush.msrb.mxu2 %v463_v54 }
 0x197   : > { %507 = vmatpush.msrb.mxu2 %v460_v52 }
 0x199   : > { %508 = vmatpush.msrb.mxu2 %v457_v50 }
 0x19b   : > { %509 = vmatpush.msrb.mxu2 %v454_v48 }
 0x19d   : > { %510 = vmatpush.msrb.mxu2 %v451_v46 }
 0x19e   : > { %683 = vmatmul.msk.f32.vlgmr.msrb.gmra.mxu2 %vm491_vm2, %v490_v59 }
 0x221   : > { %v512_v62 = vpop.f32.mrf.mxu2 }
 0x222   : > { %v515_v0 = vsub.f32 0.0, %v512_v62 }
 0x224   : > { %v517_v1 = vmul.f32 %v516_v63, %v515_v0 }
 0x226   : > { %v521_v2 = vsel %vm520_vm3, %v517_v1, -1e+30 }
 0x227   : > { %v523_v3 = vsel %vm522_vm4, %v521_v2, -inf }
 0x228   : > { %524 = vmax.xlane.f32.xlu0 %v523_v3 }
 0x29b   : > { %v525_v4 = vpop.xlane.xlu0 %524 }
 0x29c   : > { %v526_v5 = vsub.f32 %v521_v2, %v525_v4 }
 0x29e   : > { %v527_v6 = vmul.f32 1.442695, %v526_v5 }
 0x2a0   : > { %747 = vpow2.f32 %v527_v6 }
 0x2a6   : > { %v748_v7 = vpop.eup %747 }
 0x2a7   : > { %v529_v8 = vsel %vm522_vm4, %v748_v7, 0.0 }
 0x2a8   : > { %530 = vadd.xlane.f32.xlu0 %v529_v8 }
 0x31b   : > { %v531_v9 = vpop.xlane.xlu0 %530 }
 0x31c   : > { %749 = vlog2.f32 %v531_v9 }
 0x322   : > { %v750_v10 = vpop.eup %749 }
 0x323   : > { %v533_v11 = vmul.f32 0.6931472, %v750_v10 }
 0x325   : > { %v534_v12 = vsub.f32 %v526_v5, %v533_v11 }
 0x327   : > { %535 = vst [vmem:[%s233_s6] sm:$0xf] %v534_v12 }
 0x328   : > { %778 = shalt.err (!%p775_p3)
}
 0x329   : > { %708 = dma.vmem_to_hbm [thread:$0]  (%p886_p5), %s550_s7, 64, %s552_s8, %s537_s9  }
 0x32a PF: > { %p714_p4 = scmp.ge.s32.totalorder %s813_s23, 2  ;;  %s563_s16 = sand.u32 1, %s801_s20  }
 0x32b   : > { %s564_s17 = scalar_lea.sflag [#allocation4], %s563_s16 }
 0x32c   : > { %p711_p7 = pnand %p714_p4, %p890_p6 }
 0x32e   : > { %p712_p8 = pneg %p711_p7 }
 0x330   : > { %796 = dma.done.wait (%p712_p8), %s564_s17, 64  }
 0x331   : > { %798 = vsyncadd (%p712_p8), %s564_s17, 4294967232  ;;  %p16_p9 = scmp.ge.s32.totalorder %s873_s25, 4   ;;  %s1000_s20 = smov %s805_s21 }
 0x332   : > { %s1001_s21 = smov %s809_s22  ;;  %s1002_s22 = smov %s884_s28 }
 0x333   : > { %s1003_s23 = smov %s873_s25  ;;  %18 = sbr.rel (!%p16_p9) target bundleno = 5 (0x5), region = 78 }
 0x338   :  { %570 = vsyncpa [#allocation4], 1 }
 0x339   :  { %572 = vsyncpa [#allocation4 + $0x1], 1 }

</bundles_post_ra>
